<compile_context>
chip_gen: v7x
topology: tpu7x:2x2x1
jax: 0.10.0
libtpu: 0.0.40
codegen_flags: <defaults>
</compile_context>

<pallas_src>
import functools

import jax
import jax.numpy as jnp
from jax import lax
from jax.experimental import pallas as pl
from jax.experimental.pallas import tpu as pltpu

_PACK = 8      # batch rows packed per lane-row
_SUBLANE = 8   # sublane alignment for row tiles


def _round_up(x, m):
    return ((x + m - 1) // m) * m


def _seg_reduce_bcast(x, seg_width, op):
    """Reduce within contiguous lane segments of `seg_width`, broadcast back.

    x: (rows, lanes) with lanes % seg_width == 0.  Uses only static lane
    slices, lane reductions, lane broadcasts and selects (all cheap / XLU-VPU).
    """
    rows, lanes = x.shape
    nseg = lanes // seg_width
    if nseg == 1:
        r = op(x, axis=-1, keepdims=True)
        return jnp.broadcast_to(r, x.shape)
    lane_idx = lax.broadcasted_iota(jnp.int32, x.shape, dimension=1)
    out = jnp.zeros_like(x)
    for k in range(nseg):
        r = op(x[:, k * seg_width:(k + 1) * seg_width], axis=-1, keepdims=True)
        in_seg = (lane_idx >= k * seg_width) & (lane_idx < (k + 1) * seg_width)
        out = jnp.where(in_seg, r, out)
    return out


def _mlp_softmax_kernel(x_ref, w1_ref, b1_ref, w2_ref, b2_ref, out_ref,
                        *, seg_width, total_rows):
    # fc1 + ReLU (MXU matmul, f32 accumulation)
    h = jnp.dot(x_ref[...], w1_ref[...], preferred_element_type=jnp.float32)
    h = jnp.maximum(h + b1_ref[...], 0.0)

    # fc2
    logits = jnp.dot(h, w2_ref[...], preferred_element_type=jnp.float32)
    logits = logits + b2_ref[...]

    if total_rows is not None:
        # Gridded path: the last block may be partial.  Zero the logits of rows
        # past the end so garbage never reaches exp (their writes are dropped).
        tile_rows = x_ref.shape[0]
        row_idx = (pl.program_id(0) * tile_rows
                   + lax.broadcasted_iota(jnp.int32, logits.shape, dimension=0))
        logits = jnp.where(row_idx < total_rows, logits, 0.0)

    # Numerically stable (segmented) softmax over groups of `seg_width` lanes.
    m = _seg_reduce_bcast(logits, seg_width, jnp.max)
    e = jnp.exp(logits - m)
    denom = _seg_reduce_bcast(e, seg_width, jnp.sum)
    out_ref[...] = (e / denom).astype(out_ref.dtype)


def _cost_estimate(R, Din, Dh, Dout):
    return pl.CostEstimate(
        flops=2 * R * (Din * Dh + Dh * Dout),
        transcendentals=R * Dout,
        bytes_accessed=4 * (R * Din + Din * Dh + Dh + Dh * Dout + Dout + R * Dout),
    )


def _run(xp, w1p, b1p, w2p, b2p, *, seg_width, rows_cutoff, rows_tile):
    """Run the kernel on row-major (rows, Din) input with resident weights."""
    R, Din = xp.shape
    Dh = w1p.shape[1]
    Dout = w2p.shape[1]
    cost = _cost_estimate(R, Din, Dh, Dout)

    # --- small path: single block, no grid, no pipelining machinery ---------
    if R <= rows_cutoff:
        kern = functools.partial(_mlp_softmax_kernel,
                                 seg_width=seg_width, total_rows=None)
        return pl.pallas_call(
            kern,
            out_shape=jax.ShapeDtypeStruct((R, Dout), jnp.float32),
            in_specs=[pl.BlockSpec(memory_space=pltpu.MemorySpace.VMEM)] * 5,
            out_specs=pl.BlockSpec(memory_space=pltpu.MemorySpace.VMEM),
            cost_estimate=cost,
        )(xp, w1p, b1p, w2p, b2p)

    # --- gridded path: stream row tiles, weights stay resident in VMEM ------
    # Guarantee >=2 tiles (so v7x can shard the parallel axis on 2 TCs) and a
    # sublane-aligned tile.  No padding / slicing of x or out in HBM.
    tile = min(rows_tile, max(_SUBLANE, _round_up(pl.cdiv(R, 2), _SUBLANE)))
    n_tiles = pl.cdiv(R, tile)
    kern = functools.partial(_mlp_softmax_kernel,
                             seg_width=seg_width, total_rows=R)
    return pl.pallas_call(
        kern,
        out_shape=jax.ShapeDtypeStruct((R, Dout), jnp.float32),
        grid=(n_tiles,),
        in_specs=[
            pl.BlockSpec((tile, Din), lambda i: (i, 0)),   # x: streamed over rows
            pl.BlockSpec((Din, Dh), lambda i: (0, 0)),     # w1: resident
            pl.BlockSpec((1, Dh), lambda i: (0, 0)),       # b1: resident
            pl.BlockSpec((Dh, Dout), lambda i: (0, 0)),    # w2: resident
            pl.BlockSpec((1, Dout), lambda i: (0, 0)),     # b2: resident
        ],
        out_specs=pl.BlockSpec((tile, Dout), lambda i: (i, 0)),
        compiler_params=pltpu.CompilerParams(
            dimension_semantics=("parallel",),             # 2-TC sharding on v7x
        ),
        cost_estimate=cost,
    )(xp, w1p, b1p, w2p, b2p)


def menu_recommender(x, w1, b1, w2, b2, *, batch_tile=4096, small_batch_cutoff=512):
    """Forward pass of MenuRecommender: softmax(relu(x@w1+b1)@w2+b2, axis=1)."""
    B, D = x.shape
    H = w1.shape[1]
    O = w2.shape[1]
    b1 = b1.reshape(1, H)
    b2 = b2.reshape(1, O)

    if B > 0 and B % _PACK == 0:
        # Packed path: 8 rows per lane-row, block-diagonal weights.
        P = _PACK
        Bp = B // P
        x_p = x.reshape(Bp, P * D)                       # free: same HBM bytes
        eye = jnp.eye(P, dtype=jnp.float32)
        w1_bd = jnp.kron(eye, w1.astype(jnp.float32))    # (P*D, P*H), built once
        w2_bd = jnp.kron(eye, w2.astype(jnp.float32))    # (P*H, P*O), built once
        b1_t = jnp.tile(b1, (1, P))                      # (1, P*H)
        b2_t = jnp.tile(b2, (1, P))                      # (1, P*O)
        out_p = _run(x_p, w1_bd, b1_t, w2_bd, b2_t,
                     seg_width=O,
                     rows_cutoff=max(1, small_batch_cutoff // P),
                     rows_tile=max(_SUBLANE, batch_tile // P))
        return out_p.reshape(B, O)                       # free: same HBM bytes

    # Fallback (batch not divisible by the packing factor): unpacked layout.
    # TODO(synk): remainder rows could also be packed via a tiny tail kernel.
    return _run(x, w1, b1, w2, b2, seg_width=O,
                rows_cutoff=small_batch_cutoff,
                rows_tile=min(max(_SUBLANE, batch_tile), 2048))


def _reference(x, w1, b1, w2, b2):
    h = jnp.maximum(x @ w1 + b1, 0.0)
    return jax.nn.softmax(h @ w2 + b2, axis=1)


if __name__ == "__main__":
    input_dim, hidden_dim, output_dim = 32, 64, 16

    key = jax.random.PRNGKey(0)
    kx1, kx2, kx3, kx4, k1, k2, k3, k4 = jax.random.split(key, 8)

    bound1 = 1.0 / (input_dim ** 0.5)
    bound2 = 1.0 / (hidden_dim ** 0.5)
    w1 = jax.random.uniform(k1, (input_dim, hidden_dim), jnp.float32, -bound1, bound1)
    b1 = jax.random.uniform(k2, (1, hidden_dim), jnp.float32, -bound1, bound1)
    w2 = jax.random.uniform(k3, (hidden_dim, output_dim), jnp.float32, -bound2, bound2)
    b2 = jax.random.uniform(k4, (1, output_dim), jnp.float32, -bound2, bound2)

    # 1) Packed, single-block path (B=8 -> 1 packed lane-row).
    x1 = jax.random.normal(kx1, (8, input_dim), jnp.float32)
    o1 = jax.block_until_ready(menu_recommender(x1, w1, b1, w2, b2))
    r1 = _reference(x1, w1, b1, w2, b2)
    assert o1.shape == (8, output_dim)
    assert jnp.allclose(o1, r1, atol=1e-5, rtol=1e-5)
    assert jnp.allclose(jnp.sum(o1, axis=1), 1.0, atol=1e-5)

    # 2) Packed, gridded path with >=2 tiles and a partial last block
    #    (B=80 -> 10 packed rows, tile=8 packed rows).
    x2 = jax.random.normal(kx2, (80, input_dim), jnp.float32)
    o2 = jax.block_until_ready(
        menu_recommender(x2, w1, b1, w2, b2, batch_tile=64, small_batch_cutoff=8))
    r2 = _reference(x2, w1, b1, w2, b2)
    assert o2.shape == (80, output_dim)
    assert jnp.allclose(o2, r2, atol=1e-5, rtol=1e-5)
    assert jnp.allclose(jnp.sum(o2, axis=1), 1.0, atol=1e-5)

    # 3) Fallback path (batch not divisible by 8), single block.
    x3 = jax.random.normal(kx3, (13, input_dim), jnp.float32)
    o3 = jax.block_until_ready(menu_recommender(x3, w1, b1, w2, b2))
    r3 = _reference(x3, w1, b1, w2, b2)
    assert o3.shape == (13, output_dim)
    assert jnp.allclose(o3, r3, atol=1e-5, rtol=1e-5)

    # 4) Fallback path, gridded with a partial last block (B=52, tile=32 rows).
    x4 = jax.random.normal(kx4, (52, input_dim), jnp.float32)
    o4 = jax.block_until_ready(
        menu_recommender(x4, w1, b1, w2, b2, batch_tile=32, small_batch_cutoff=8))
    r4 = _reference(x4, w1, b1, w2, b2)
    assert o4.shape == (52, output_dim)
    assert jnp.allclose(o4, r4, atol=1e-5, rtol=1e-5)

    print("KERNEL_OK")
</pallas_src>

<mosaic_0001>
module attributes {stable_mosaic.version = 11 : i64} {
  func.func @_mlp_softmax_kernel(%arg0: memref<1x256xf32, #tpu.memory_space<vmem>>, %arg1: memref<256x512xf32, #tpu.memory_space<vmem>>, %arg2: memref<1x512xf32, #tpu.memory_space<vmem>>, %arg3: memref<512x128xf32, #tpu.memory_space<vmem>>, %arg4: memref<1x128xf32, #tpu.memory_space<vmem>>, %arg5: memref<1x128xf32, #tpu.memory_space<vmem>>) attributes {dimension_semantics = [], scalar_prefetch = 0 : i64, scratch_operands = 0 : i64, tpu.core_type = #tpu.core_type<tc>} {
    %c0 = arith.constant 0 : index
    %c0_0 = arith.constant 0 : index
    %0 = vector.load %arg0[%c0, %c0_0] : memref<1x256xf32, #tpu.memory_space<vmem>>, vector<1x256xf32>
    %c0_1 = arith.constant 0 : index
    %c0_2 = arith.constant 0 : index
    %1 = vector.load %arg1[%c0_1, %c0_2] : memref<256x512xf32, #tpu.memory_space<vmem>>, vector<256x512xf32>
    %cst = arith.constant dense<0.000000e+00> : vector<1x512xf32>
    %2 = tpu.matmul %0, %1, %cst {dimension_numbers = #tpu.dot_dimension_numbers<[1], [0], [0], [1], [0, 0, 1, 1], [], []>} : vector<1x256xf32>, vector<256x512xf32>, vector<1x512xf32> -> vector<1x512xf32>
    %c0_3 = arith.constant 0 : index
    %c0_4 = arith.constant 0 : index
    %3 = vector.load %arg2[%c0_3, %c0_4] : memref<1x512xf32, #tpu.memory_space<vmem>>, vector<1x512xf32>
    %4 = arith.addf %2, %3 : vector<1x512xf32>
    %cst_5 = arith.constant 0.000000e+00 : f32
    %5 = vector.broadcast %cst_5 : f32 to vector<1x512xf32>
    %6 = arith.maximumf %4, %5 : vector<1x512xf32>
    %c0_6 = arith.constant 0 : index
    %c0_7 = arith.constant 0 : index
    %7 = vector.load %arg3[%c0_6, %c0_7] : memref<512x128xf32, #tpu.memory_space<vmem>>, vector<512x128xf32>
    %cst_8 = arith.constant dense<0.000000e+00> : vector<1x128xf32>
    %8 = tpu.matmul %6, %7, %cst_8 {dimension_numbers = #tpu.dot_dimension_numbers<[1], [0], [0], [1], [0, 0, 1, 1], [], []>} : vector<1x512xf32>, vector<512x128xf32>, vector<1x128xf32> -> vector<1x128xf32>
    %c0_9 = arith.constant 0 : index
    %c0_10 = arith.constant 0 : index
    %9 = vector.load %arg4[%c0_9, %c0_10] : memref<1x128xf32, #tpu.memory_space<vmem>>, vector<1x128xf32>
    %10 = arith.addf %8, %9 : vector<1x128xf32>
    %11 = tpu.iota {dimensions = array<i32: 1>} : vector<1x128xi32>
    %cst_11 = arith.constant 0.000000e+00 : f32
    %12 = vector.broadcast %cst_11 : f32 to vector<1x128xf32>
    %13 = vector.extract_strided_slice %10 {offsets = [0, 0], sizes = [1, 16], strides = [1, 1]} : vector<1x128xf32> to vector<1x16xf32>
    %cst_12 = arith.constant dense<0xFF800000> : vector<1xf32>
    %14 = vector.multi_reduction <maximumf>, %13, %cst_12 [1] : vector<1x16xf32> to vector<1xf32>
    %15 = vector.shape_cast %14 : vector<1xf32> to vector<1x1xf32>
    %c0_i32 = arith.constant 0 : i32
    %16 = vector.broadcast %c0_i32 : i32 to vector<1x128xi32>
    %17 = arith.cmpi sge, %11, %16 : vector<1x128xi32>
    %c16_i32 = arith.constant 16 : i32
    %18 = vector.broadcast %c16_i32 : i32 to vector<1x128xi32>
    %19 = arith.cmpi slt, %11, %18 : vector<1x128xi32>
    %20 = arith.andi %17, %19 : vector<1x128xi1>
    %21 = vector.shape_cast %15 : vector<1x1xf32> to vector<1x1xf32>
    %22 = vector.broadcast %21 : vector<1x1xf32> to vector<1x128xf32>
    %23 = arith.select %20, %22, %12 : vector<1x128xi1>, vector<1x128xf32>
    %24 = vector.extract_strided_slice %10 {offsets = [0, 16], sizes = [1, 16], strides = [1, 1]} : vector<1x128xf32> to vector<1x16xf32>
    %cst_13 = arith.constant dense<0xFF800000> : vector<1xf32>
    %25 = vector.multi_reduction <maximumf>, %24, %cst_13 [1] : vector<1x16xf32> to vector<1xf32>
    %26 = vector.shape_cast %25 : vector<1xf32> to vector<1x1xf32>
    %c16_i32_14 = arith.constant 16 : i32
    %27 = vector.broadcast %c16_i32_14 : i32 to vector<1x128xi32>
    %28 = arith.cmpi sge, %11, %27 : vector<1x128xi32>
    %c32_i32 = arith.constant 32 : i32
    %29 = vector.broadcast %c32_i32 : i32 to vector<1x128xi32>
    %30 = arith.cmpi slt, %11, %29 : vector<1x128xi32>
    %31 = arith.andi %28, %30 : vector<1x128xi1>
    %32 = vector.shape_cast %26 : vector<1x1xf32> to vector<1x1xf32>
    %33 = vector.broadcast %32 : vector<1x1xf32> to vector<1x128xf32>
    %34 = arith.select %31, %33, %23 : vector<1x128xi1>, vector<1x128xf32>
    %35 = vector.extract_strided_slice %10 {offsets = [0, 32], sizes = [1, 16], strides = [1, 1]} : vector<1x128xf32> to vector<1x16xf32>
    %cst_15 = arith.constant dense<0xFF800000> : vector<1xf32>
    %36 = vector.multi_reduction <maximumf>, %35, %cst_15 [1] : vector<1x16xf32> to vector<1xf32>
    %37 = vector.shape_cast %36 : vector<1xf32> to vector<1x1xf32>
    %c32_i32_16 = arith.constant 32 : i32
    %38 = vector.broadcast %c32_i32_16 : i32 to vector<1x128xi32>
    %39 = arith.cmpi sge, %11, %38 : vector<1x128xi32>
    %c48_i32 = arith.constant 48 : i32
    %40 = vector.broadcast %c48_i32 : i32 to vector<1x128xi32>
    %41 = arith.cmpi slt, %11, %40 : vector<1x128xi32>
    %42 = arith.andi %39, %41 : vector<1x128xi1>
    %43 = vector.shape_cast %37 : vector<1x1xf32> to vector<1x1xf32>
    %44 = vector.broadcast %43 : vector<1x1xf32> to vector<1x128xf32>
    %45 = arith.select %42, %44, %34 : vector<1x128xi1>, vector<1x128xf32>
    %46 = vector.extract_strided_slice %10 {offsets = [0, 48], sizes = [1, 16], strides = [1, 1]} : vector<1x128xf32> to vector<1x16xf32>
    %cst_17 = arith.constant dense<0xFF800000> : vector<1xf32>
    %47 = vector.multi_reduction <maximumf>, %46, %cst_17 [1] : vector<1x16xf32> to vector<1xf32>
    %48 = vector.shape_cast %47 : vector<1xf32> to vector<1x1xf32>
    %c48_i32_18 = arith.constant 48 : i32
    %49 = vector.broadcast %c48_i32_18 : i32 to vector<1x128xi32>
    %50 = arith.cmpi sge, %11, %49 : vector<1x128xi32>
    %c64_i32 = arith.constant 64 : i32
    %51 = vector.broadcast %c64_i32 : i32 to vector<1x128xi32>
    %52 = arith.cmpi slt, %11, %51 : vector<1x128xi32>
    %53 = arith.andi %50, %52 : vector<1x128xi1>
    %54 = vector.shape_cast %48 : vector<1x1xf32> to vector<1x1xf32>
    %55 = vector.broadcast %54 : vector<1x1xf32> to vector<1x128xf32>
    %56 = arith.select %53, %55, %45 : vector<1x128xi1>, vector<1x128xf32>
    %57 = vector.extract_strided_slice %10 {offsets = [0, 64], sizes = [1, 16], strides = [1, 1]} : vector<1x128xf32> to vector<1x16xf32>
    %cst_19 = arith.constant dense<0xFF800000> : vector<1xf32>
    %58 = vector.multi_reduction <maximumf>, %57, %cst_19 [1] : vector<1x16xf32> to vector<1xf32>
    %59 = vector.shape_cast %58 : vector<1xf32> to vector<1x1xf32>
    %c64_i32_20 = arith.constant 64 : i32
    %60 = vector.broadcast %c64_i32_20 : i32 to vector<1x128xi32>
    %61 = arith.cmpi sge, %11, %60 : vector<1x128xi32>
    %c80_i32 = arith.constant 80 : i32
    %62 = vector.broadcast %c80_i32 : i32 to vector<1x128xi32>
    %63 = arith.cmpi slt, %11, %62 : vector<1x128xi32>
    %64 = arith.andi %61, %63 : vector<1x128xi1>
    %65 = vector.shape_cast %59 : vector<1x1xf32> to vector<1x1xf32>
    %66 = vector.broadcast %65 : vector<1x1xf32> to vector<1x128xf32>
    %67 = arith.select %64, %66, %56 : vector<1x128xi1>, vector<1x128xf32>
    %68 = vector.extract_strided_slice %10 {offsets = [0, 80], sizes = [1, 16], strides = [1, 1]} : vector<1x128xf32> to vector<1x16xf32>
    %cst_21 = arith.constant dense<0xFF800000> : vector<1xf32>
    %69 = vector.multi_reduction <maximumf>, %68, %cst_21 [1] : vector<1x16xf32> to vector<1xf32>
    %70 = vector.shape_cast %69 : vector<1xf32> to vector<1x1xf32>
    %c80_i32_22 = arith.constant 80 : i32
    %71 = vector.broadcast %c80_i32_22 : i32 to vector<1x128xi32>
    %72 = arith.cmpi sge, %11, %71 : vector<1x128xi32>
    %c96_i32 = arith.constant 96 : i32
    %73 = vector.broadcast %c96_i32 : i32 to vector<1x128xi32>
    %74 = arith.cmpi slt, %11, %73 : vector<1x128xi32>
    %75 = arith.andi %72, %74 : vector<1x128xi1>
    %76 = vector.shape_cast %70 : vector<1x1xf32> to vector<1x1xf32>
    %77 = vector.broadcast %76 : vector<1x1xf32> to vector<1x128xf32>
    %78 = arith.select %75, %77, %67 : vector<1x128xi1>, vector<1x128xf32>
    %79 = vector.extract_strided_slice %10 {offsets = [0, 96], sizes = [1, 16], strides = [1, 1]} : vector<1x128xf32> to vector<1x16xf32>
    %cst_23 = arith.constant dense<0xFF800000> : vector<1xf32>
    %80 = vector.multi_reduction <maximumf>, %79, %cst_23 [1] : vector<1x16xf32> to vector<1xf32>
    %81 = vector.shape_cast %80 : vector<1xf32> to vector<1x1xf32>
    %c96_i32_24 = arith.constant 96 : i32
    %82 = vector.broadcast %c96_i32_24 : i32 to vector<1x128xi32>
    %83 = arith.cmpi sge, %11, %82 : vector<1x128xi32>
    %c112_i32 = arith.constant 112 : i32
    %84 = vector.broadcast %c112_i32 : i32 to vector<1x128xi32>
    %85 = arith.cmpi slt, %11, %84 : vector<1x128xi32>
    %86 = arith.andi %83, %85 : vector<1x128xi1>
    %87 = vector.shape_cast %81 : vector<1x1xf32> to vector<1x1xf32>
    %88 = vector.broadcast %87 : vector<1x1xf32> to vector<1x128xf32>
    %89 = arith.select %86, %88, %78 : vector<1x128xi1>, vector<1x128xf32>
    %90 = vector.extract_strided_slice %10 {offsets = [0, 112], sizes = [1, 16], strides = [1, 1]} : vector<1x128xf32> to vector<1x16xf32>
    %cst_25 = arith.constant dense<0xFF800000> : vector<1xf32>
    %91 = vector.multi_reduction <maximumf>, %90, %cst_25 [1] : vector<1x16xf32> to vector<1xf32>
    %92 = vector.shape_cast %91 : vector<1xf32> to vector<1x1xf32>
    %c112_i32_26 = arith.constant 112 : i32
    %93 = vector.broadcast %c112_i32_26 : i32 to vector<1x128xi32>
    %94 = arith.cmpi sge, %11, %93 : vector<1x128xi32>
    %c128_i32 = arith.constant 128 : i32
    %95 = vector.broadcast %c128_i32 : i32 to vector<1x128xi32>
    %96 = arith.cmpi slt, %11, %95 : vector<1x128xi32>
    %97 = arith.andi %94, %96 : vector<1x128xi1>
    %98 = vector.shape_cast %92 : vector<1x1xf32> to vector<1x1xf32>
    %99 = vector.broadcast %98 : vector<1x1xf32> to vector<1x128xf32>
    %100 = arith.select %97, %99, %89 : vector<1x128xi1>, vector<1x128xf32>
    %101 = arith.subf %10, %100 : vector<1x128xf32>
    %102 = math.exp %101 : vector<1x128xf32>
    %103 = tpu.iota {dimensions = array<i32: 1>} : vector<1x128xi32>
    %cst_27 = arith.constant 0.000000e+00 : f32
    %104 = vector.broadcast %cst_27 : f32 to vector<1x128xf32>
    %105 = vector.extract_strided_slice %102 {offsets = [0, 0], sizes = [1, 16], strides = [1, 1]} : vector<1x128xf32> to vector<1x16xf32>
    %cst_28 = arith.constant dense<0.000000e+00> : vector<1xf32>
    %106 = vector.multi_reduction <add>, %105, %cst_28 [1] : vector<1x16xf32> to vector<1xf32>
    %107 = vector.shape_cast %106 : vector<1xf32> to vector<1x1xf32>
    %c0_i32_29 = arith.constant 0 : i32
    %108 = vector.broadcast %c0_i32_29 : i32 to vector<1x128xi32>
    %109 = arith.cmpi sge, %103, %108 : vector<1x128xi32>
    %c16_i32_30 = arith.constant 16 : i32
    %110 = vector.broadcast %c16_i32_30 : i32 to vector<1x128xi32>
    %111 = arith.cmpi slt, %103, %110 : vector<1x128xi32>
    %112 = arith.andi %109, %111 : vector<1x128xi1>
    %113 = vector.shape_cast %107 : vector<1x1xf32> to vector<1x1xf32>
    %114 = vector.broadcast %113 : vector<1x1xf32> to vector<1x128xf32>
    %115 = arith.select %112, %114, %104 : vector<1x128xi1>, vector<1x128xf32>
    %116 = vector.extract_strided_slice %102 {offsets = [0, 16], sizes = [1, 16], strides = [1, 1]} : vector<1x128xf32> to vector<1x16xf32>
    %cst_31 = arith.constant dense<0.000000e+00> : vector<1xf32>
    %117 = vector.multi_reduction <add>, %116, %cst_31 [1] : vector<1x16xf32> to vector<1xf32>
    %118 = vector.shape_cast %117 : vector<1xf32> to vector<1x1xf32>
    %c16_i32_32 = arith.constant 16 : i32
    %119 = vector.broadcast %c16_i32_32 : i32 to vector<1x128xi32>
    %120 = arith.cmpi sge, %103, %119 : vector<1x128xi32>
    %c32_i32_33 = arith.constant 32 : i32
    %121 = vector.broadcast %c32_i32_33 : i32 to vector<1x128xi32>
    %122 = arith.cmpi slt, %103, %121 : vector<1x128xi32>
    %123 = arith.andi %120, %122 : vector<1x128xi1>
    %124 = vector.shape_cast %118 : vector<1x1xf32> to vector<1x1xf32>
    %125 = vector.broadcast %124 : vector<1x1xf32> to vector<1x128xf32>
    %126 = arith.select %123, %125, %115 : vector<1x128xi1>, vector<1x128xf32>
    %127 = vector.extract_strided_slice %102 {offsets = [0, 32], sizes = [1, 16], strides = [1, 1]} : vector<1x128xf32> to vector<1x16xf32>
    %cst_34 = arith.constant dense<0.000000e+00> : vector<1xf32>
    %128 = vector.multi_reduction <add>, %127, %cst_34 [1] : vector<1x16xf32> to vector<1xf32>
    %129 = vector.shape_cast %128 : vector<1xf32> to vector<1x1xf32>
    %c32_i32_35 = arith.constant 32 : i32
    %130 = vector.broadcast %c32_i32_35 : i32 to vector<1x128xi32>
    %131 = arith.cmpi sge, %103, %130 : vector<1x128xi32>
    %c48_i32_36 = arith.constant 48 : i32
    %132 = vector.broadcast %c48_i32_36 : i32 to vector<1x128xi32>
    %133 = arith.cmpi slt, %103, %132 : vector<1x128xi32>
    %134 = arith.andi %131, %133 : vector<1x128xi1>
    %135 = vector.shape_cast %129 : vector<1x1xf32> to vector<1x1xf32>
    %136 = vector.broadcast %135 : vector<1x1xf32> to vector<1x128xf32>
    %137 = arith.select %134, %136, %126 : vector<1x128xi1>, vector<1x128xf32>
    %138 = vector.extract_strided_slice %102 {offsets = [0, 48], sizes = [1, 16], strides = [1, 1]} : vector<1x128xf32> to vector<1x16xf32>
    %cst_37 = arith.constant dense<0.000000e+00> : vector<1xf32>
    %139 = vector.multi_reduction <add>, %138, %cst_37 [1] : vector<1x16xf32> to vector<1xf32>
    %140 = vector.shape_cast %139 : vector<1xf32> to vector<1x1xf32>
    %c48_i32_38 = arith.constant 48 : i32
    %141 = vector.broadcast %c48_i32_38 : i32 to vector<1x128xi32>
    %142 = arith.cmpi sge, %103, %141 : vector<1x128xi32>
    %c64_i32_39 = arith.constant 64 : i32
    %143 = vector.broadcast %c64_i32_39 : i32 to vector<1x128xi32>
    %144 = arith.cmpi slt, %103, %143 : vector<1x128xi32>
    %145 = arith.andi %142, %144 : vector<1x128xi1>
    %146 = vector.shape_cast %140 : vector<1x1xf32> to vector<1x1xf32>
    %147 = vector.broadcast %146 : vector<1x1xf32> to vector<1x128xf32>
    %148 = arith.select %145, %147, %137 : vector<1x128xi1>, vector<1x128xf32>
    %149 = vector.extract_strided_slice %102 {offsets = [0, 64], sizes = [1, 16], strides = [1, 1]} : vector<1x128xf32> to vector<1x16xf32>
    %cst_40 = arith.constant dense<0.000000e+00> : vector<1xf32>
    %150 = vector.multi_reduction <add>, %149, %cst_40 [1] : vector<1x16xf32> to vector<1xf32>
    %151 = vector.shape_cast %150 : vector<1xf32> to vector<1x1xf32>
    %c64_i32_41 = arith.constant 64 : i32
    %152 = vector.broadcast %c64_i32_41 : i32 to vector<1x128xi32>
    %153 = arith.cmpi sge, %103, %152 : vector<1x128xi32>
    %c80_i32_42 = arith.constant 80 : i32
    %154 = vector.broadcast %c80_i32_42 : i32 to vector<1x128xi32>
    %155 = arith.cmpi slt, %103, %154 : vector<1x128xi32>
    %156 = arith.andi %153, %155 : vector<1x128xi1>
    %157 = vector.shape_cast %151 : vector<1x1xf32> to vector<1x1xf32>
    %158 = vector.broadcast %157 : vector<1x1xf32> to vector<1x128xf32>
    %159 = arith.select %156, %158, %148 : vector<1x128xi1>, vector<1x128xf32>
    %160 = vector.extract_strided_slice %102 {offsets = [0, 80], sizes = [1, 16], strides = [1, 1]} : vector<1x128xf32> to vector<1x16xf32>
    %cst_43 = arith.constant dense<0.000000e+00> : vector<1xf32>
    %161 = vector.multi_reduction <add>, %160, %cst_43 [1] : vector<1x16xf32> to vector<1xf32>
    %162 = vector.shape_cast %161 : vector<1xf32> to vector<1x1xf32>
    %c80_i32_44 = arith.constant 80 : i32
    %163 = vector.broadcast %c80_i32_44 : i32 to vector<1x128xi32>
    %164 = arith.cmpi sge, %103, %163 : vector<1x128xi32>
    %c96_i32_45 = arith.constant 96 : i32
    %165 = vector.broadcast %c96_i32_45 : i32 to vector<1x128xi32>
    %166 = arith.cmpi slt, %103, %165 : vector<1x128xi32>
    %167 = arith.andi %164, %166 : vector<1x128xi1>
    %168 = vector.shape_cast %162 : vector<1x1xf32> to vector<1x1xf32>
    %169 = vector.broadcast %168 : vector<1x1xf32> to vector<1x128xf32>
    %170 = arith.select %167, %169, %159 : vector<1x128xi1>, vector<1x128xf32>
    %171 = vector.extract_strided_slice %102 {offsets = [0, 96], sizes = [1, 16], strides = [1, 1]} : vector<1x128xf32> to vector<1x16xf32>
    %cst_46 = arith.constant dense<0.000000e+00> : vector<1xf32>
    %172 = vector.multi_reduction <add>, %171, %cst_46 [1] : vector<1x16xf32> to vector<1xf32>
    %173 = vector.shape_cast %172 : vector<1xf32> to vector<1x1xf32>
    %c96_i32_47 = arith.constant 96 : i32
    %174 = vector.broadcast %c96_i32_47 : i32 to vector<1x128xi32>
    %175 = arith.cmpi sge, %103, %174 : vector<1x128xi32>
    %c112_i32_48 = arith.constant 112 : i32
    %176 = vector.broadcast %c112_i32_48 : i32 to vector<1x128xi32>
    %177 = arith.cmpi slt, %103, %176 : vector<1x128xi32>
    %178 = arith.andi %175, %177 : vector<1x128xi1>
    %179 = vector.shape_cast %173 : vector<1x1xf32> to vector<1x1xf32>
    %180 = vector.broadcast %179 : vector<1x1xf32> to vector<1x128xf32>
    %181 = arith.select %178, %180, %170 : vector<1x128xi1>, vector<1x128xf32>
    %182 = vector.extract_strided_slice %102 {offsets = [0, 112], sizes = [1, 16], strides = [1, 1]} : vector<1x128xf32> to vector<1x16xf32>
    %cst_49 = arith.constant dense<0.000000e+00> : vector<1xf32>
    %183 = vector.multi_reduction <add>, %182, %cst_49 [1] : vector<1x16xf32> to vector<1xf32>
    %184 = vector.shape_cast %183 : vector<1xf32> to vector<1x1xf32>
    %c112_i32_50 = arith.constant 112 : i32
    %185 = vector.broadcast %c112_i32_50 : i32 to vector<1x128xi32>
    %186 = arith.cmpi sge, %103, %185 : vector<1x128xi32>
    %c128_i32_51 = arith.constant 128 : i32
    %187 = vector.broadcast %c128_i32_51 : i32 to vector<1x128xi32>
    %188 = arith.cmpi slt, %103, %187 : vector<1x128xi32>
    %189 = arith.andi %186, %188 : vector<1x128xi1>
    %190 = vector.shape_cast %184 : vector<1x1xf32> to vector<1x1xf32>
    %191 = vector.broadcast %190 : vector<1x1xf32> to vector<1x128xf32>
    %192 = arith.select %189, %191, %181 : vector<1x128xi1>, vector<1x128xf32>
    %193 = arith.divf %102, %192 : vector<1x128xf32>
    %c0_52 = arith.constant 0 : index
    %c0_53 = arith.constant 0 : index
    %194 = vector.load %arg5[%c0_52, %c0_53] : memref<1x128xf32, #tpu.memory_space<vmem>>, vector<1x128xf32>
    tpu.vector_store %arg5[%c0_52, %c0_53], %193 {strides = array<i32>} : memref<1x128xf32, #tpu.memory_space<vmem>>, vector<1x128xf32>,
    return
  }
}

</mosaic_0001>

<bundles_post_ra>
// kernel: tpu_custom_call.1
= control target key start
LH: loop header
LB: loop body
LE: loop exit
PB: predicated region body
PF: predicated region fallthrough
CT: control target
= control target key end

     0   :  { %10 = vsyncpa [#allocation3], 0  ;;  %s1290_s0 = inlined_call_operand.hbm [shape: f32[1,256], index: 0, kind: input, shape index: {}]   ;;  %s1291_s1 = inlined_call_operand.hbm [shape: f32[256,512], index: 1, kind: input, shape index: {}]   ;;  %s1292_s2 = inlined_call_operand.vmem [shape: f32[1,512], index: 2, kind: input, shape index: {}]   ;;  %s1293_s3 = inlined_call_operand.hbm [shape: f32[512,128], index: 3, kind: input, shape index: {}]   ;;  %s1294_s4 = inlined_call_operand.vmem [shape: f32[1,128], index: 4, kind: input, shape index: {}]   ;;  %s1295_s5 = inlined_call_operand.hbm [shape: f32[1,128], index: 5, kind: output, shape index: {}]  }
   0x1   :  { %11 = vsyncpa [#allocation6], 0 }
   0x2   :  { %12 = vsyncpa [#allocation4], 0  ;;  %s1089_s18 = smov [#allocation5]   ;;  %s995_s22 = scalar_lea.hbm %s1291_s1, 16384 }
   0x3   :  { %s28_s19 = sshll.u32 %s1089_s18, 4  ;;  %p996_p0 = scmp.ne.s32.totalorder %s1291_s1, %s995_s22  ;;  %s29_s19 = int_to_ptr.vmem [resolvable:$true] %s28_s19 }
   0x4   :  { %p999_p1 = scmp.lt.u32.totalorder %s995_s22, %s1291_s1 }
   0x6   :  { %p1001_p2 = pnand %p999_p1, %p996_p0 }
   0x8   :  { %1004 = shalt.err (!%p1001_p2)
}
   0x9   :  { %s1005_s27 = scalar_lea.vmem %s29_s19, 16384  ;;  %p1010_p4 = scmp.lt.s32.totalorder %s29_s19, %s29_s19 }
   0xa   :  { %p1006_p3 = scmp.ne.s32.totalorder %s29_s19, %s1005_s27  ;;  %p1011_p5 = scmp.lt.s32.totalorder %s1005_s27, %s1005_s27 }
   0xc   :  { %p1012_p6 = por %p1011_p5, %p1010_p4 }
   0xe   :  { %p1013_p7 = pnand %p1012_p6, %p1006_p3 }
  0x10   :  { %1016 = shalt.err (!%p1013_p7)
}
  0x11   :  { %s1090_s28 = smov 512   ;;  %s1091_s29 = smov 32  }
  0x12   :  { %34 = dma.hbm_to_vmem [thread:$0]  %s1291_s1, 16384, %s29_s19, [#allocation6], %s1090_s28, %s1090_s28, %s1091_s29  }
  0x13   :  { %s1092_s7 = smov [#allocation2]   ;;  %s1093_s9 = smov [#allocation7]  }
  0x14   :  { %s19_s8 = sshll.u32 %s1092_s7, 4  ;;  %s42_s10 = sshll.u32 %s1093_s9, 4  ;;  %s20_s8 = int_to_ptr.vmem [resolvable:$true] %s19_s8  ;;  %s43_s10 = int_to_ptr.vmem [resolvable:$true] %s42_s10 }
  0x15   :  { %s1017_s13 = scalar_lea.hbm %s1290_s0, 32 }
  0x16   :  { %p1018_p8 = scmp.ne.s32.totalorder %s1290_s0, %s1017_s13  ;;  %p1021_p9 = scmp.lt.u32.totalorder %s1017_s13, %s1290_s0 }
  0x18   :  { %p1023_p10 = pnand %p1021_p9, %p1018_p8 }
  0x1a   :  { %1026 = shalt.err (!%p1023_p10)
}
  0x1b   :  { %s1027_s1 = scalar_lea.vmem %s20_s8, 32  ;;  %p1032_p12 = scmp.lt.s32.totalorder %s20_s8, %s20_s8 }
  0x1c   :  { %p1028_p11 = scmp.ne.s32.totalorder %s20_s8, %s1027_s1  ;;  %p1033_p13 = scmp.lt.s32.totalorder %s1027_s1, %s1027_s1 }
  0x1e   :  { %p1034_p0 = por %p1033_p13, %p1032_p12 }
  0x20   :  { %p1035_p1 = pnand %p1034_p0, %p1028_p11 }
  0x22   :  { %1038 = shalt.err (!%p1035_p1)
}
  0x23   :  { %22 = dma.hbm_to_vmem [thread:$0]  %s1290_s0, 32, %s20_s8, [#allocation3]  }
  0x24   :  { %s1039_s22 = scalar_lea.hbm %s1293_s3, 8192 }
  0x25   :  { %p1040_p2 = scmp.ne.s32.totalorder %s1293_s3, %s1039_s22  ;;  %p1043_p3 = scmp.lt.u32.totalorder %s1039_s22, %s1293_s3 }
  0x27   :  { %p1045_p4 = pnand %p1043_p3, %p1040_p2 }
  0x29   :  { %1048 = shalt.err (!%p1045_p4)
}
  0x2a   :  { %s1049_s27 = scalar_lea.vmem %s43_s10, 8192  ;;  %p1054_p6 = scmp.lt.s32.totalorder %s43_s10, %s43_s10 }
  0x2b   :  { %p1050_p5 = scmp.ne.s32.totalorder %s43_s10, %s1049_s27  ;;  %p1055_p7 = scmp.lt.s32.totalorder %s1049_s27, %s1049_s27 }
  0x2d   :  { %p1056_p8 = por %p1055_p7, %p1054_p6 }
  0x2f   :  { %p1057_p9 = pnand %p1056_p8, %p1050_p5 }
  0x31   :  { %1060 = shalt.err (!%p1057_p9)
}
  0x32   :  { %s1094_s0 = smov 128   ;;  %s1095_s28 = smov 8  }
  0x33   :  { %48 = dma.hbm_to_vmem [thread:$0]  %s1293_s3, 8192, %s43_s10, [#allocation6], %s1094_s0, %s1094_s0, %s1095_s28  }
  0x34   :  { %1083 = dma.done.wait [#allocation3], 32  }
  0x35   :  { %1084 = vsyncadd [#allocation3], 4294967264 }
  0x36   :  { %1085 = dma.done.wait [#allocation6], 24576  }
  0x37   :  { %1086 = vsyncadd [#allocation6], 4294942720  ;;  %v62_v0 = vld [vmem:[#allocation5 + $0x8] sm:$0xff]  ;;  %v64_v2 = vld [vmem:[#allocation5 + $0x18] sm:$0xff]  ;;  %vm591_vm0 = vcmask 385280   ;;  %vm575_vm1 = vcmask 122880  }
  0x38   :  { %v66_v1 = vld [vmem:[#allocation5 + $0x28] sm:$0xff]  ;;  %v68_v4 = vld [vmem:[#allocation5 + $0x38] sm:$0xff]  ;;  %v61_v5 = vld [vmem:[#allocation5] sm:$0xff]  ;;  %vm599_vm2 = vcmask 516480   ;;  %vm583_vm3 = vcmask 254080   ;;  %vm615_vm4 = vcmask 778880  }
  0x39   :  { %v785_v3 = vpack.c.bf16 %v66_v1, %v62_v0  ;;  %v65_v6 = vld [vmem:[#allocation5 + $0x20] sm:$0xff]  ;;  %v849_v7 = vpack.c.bf16 %v68_v4, %v64_v2  ;;  %v63_v9 = vld [vmem:[#allocation5 + $0x10] sm:$0xff]  ;;  %v70_v11 = vld [vmem:[#allocation5 + $0x48] sm:$0xff]  ;;  %vm607_vm5 = vcmask 647680   ;;  %vm631_vm6 = vcmask 1041280   ;;  %s1097_s9 = smov 112  }
  0x3a   :  { %v787_v8 = vpack.c.bf16 %v65_v6, %v61_v5  ;;  %v67_v10 = vld [vmem:[#allocation5 + $0x30] sm:$0xff]  ;;  %v74_v13 = vld [vmem:[#allocation5 + $0x68] sm:$0xff]  ;;  %v72_v14 = vld [vmem:[#allocation5 + $0x58] sm:$0xff]  ;;  %vm623_vm7 = vcmask 910080   ;;  %s1098_s10 = smov 80   ;;  %s1099_s11 = smov 64  }
  0x3b   :  { %786 = vmatprep.subr.bf16.mxu0 %v785_v3  ;;  %v851_v12 = vpack.c.bf16 %v67_v10, %v63_v9  ;;  %v76_v15 = vld [vmem:[#allocation5 + $0x78] sm:$0xff]  ;;  %850 = vmatprep.subr.bf16.mxu1 %v849_v7  ;;  %v789_v16 = vpack.c.bf16 %v74_v13, %v70_v11  ;;  %v69_v18 = vld [vmem:[#allocation5 + $0x40] sm:$0xff]  ;;  %v71_v20 = vld [vmem:[#allocation5 + $0x50] sm:$0xff]  ;;  %s1100_s12 = smov 48   ;;  %s1101_s13 = smov 16  }
  0x3c   :  { %788 = vmatpush1.bf16.msra.mxu0 %v787_v8  ;;  %v853_v17 = vpack.c.bf16 %v76_v15, %v72_v14  ;;  %v73_v19 = vld [vmem:[#allocation5 + $0x60] sm:$0xff]  ;;  %v75_v22 = vld [vmem:[#allocation5 + $0x70] sm:$0xff]  ;;  %v78_v23 = vld [vmem:[#allocation5 + $0x88] sm:$0xff] }
  0x3d   :  { %852 = vmatpush1.bf16.msra.mxu1 %v851_v12  ;;  %v791_v21 = vpack.c.bf16 %v73_v19, %v69_v18  ;;  %v82_v24 = vld [vmem:[#allocation5 + $0xa8] sm:$0xff]  ;;  %790 = vmatprep.subr.bf16.mxu0 %v789_v16  ;;  %v855_v25 = vpack.c.bf16 %v75_v22, %v71_v20  ;;  %v80_v27 = vld [vmem:[#allocation5 + $0x98] sm:$0xff]  ;;  %v77_v29 = vld [vmem:[#allocation5 + $0x80] sm:$0xff] }
  0x3e   :  { %854 = vmatprep.subr.bf16.mxu1 %v853_v17  ;;  %v793_v26 = vpack.c.bf16 %v82_v24, %v78_v23  ;;  %v84_v28 = vld [vmem:[#allocation5 + $0xb8] sm:$0xff]  ;;  %v81_v31 = vld [vmem:[#allocation5 + $0xa0] sm:$0xff]  ;;  %v79_v32 = vld [vmem:[#allocation5 + $0x90] sm:$0xff] }
  0x3f   :  { %v857_v30 = vpack.c.bf16 %v84_v28, %v80_v27  ;;  %v83_v33 = vld [vmem:[#allocation5 + $0xb0] sm:$0xff]  ;;  %v795_v34 = vpack.c.bf16 %v81_v31, %v77_v29  ;;  %v86_v35 = vld [vmem:[#allocation5 + $0xc8] sm:$0xff]  ;;  %v88_v37 = vld [vmem:[#allocation5 + $0xd8] sm:$0xff] }
  0x40   :  { %792 = vmatpush1.bf16.msra.mxu0 %v791_v21  ;;  %v90_v36 = vld [vmem:[#allocation5 + $0xe8] sm:$0xff]  ;;  %v859_v38 = vpack.c.bf16 %v83_v33, %v79_v32  ;;  %v92_v40 = vld [vmem:[#allocation5 + $0xf8] sm:$0xff]  ;;  %v85_v41 = vld [vmem:[#allocation5 + $0xc0] sm:$0xff] }
  0x41   :  { %856 = vmatpush1.bf16.msra.mxu1 %v855_v25  ;;  %794 = vmatprep.subr.bf16.mxu0 %v793_v26  ;;  %v797_v39 = vpack.c.bf16 %v90_v36, %v86_v35  ;;  %v89_v42 = vld [vmem:[#allocation5 + $0xe0] sm:$0xff]  ;;  %v861_v43 = vpack.c.bf16 %v92_v40, %v88_v37  ;;  %v87_v44 = vld [vmem:[#allocation5 + $0xd0] sm:$0xff]  ;;  %v94_v46 = vld [vmem:[#allocation5 + $0x108] sm:$0xff] }
  0x42   :  { %858 = vmatprep.subr.bf16.mxu1 %v857_v30  ;;  %v91_v45 = vld [vmem:[#allocation5 + $0xf0] sm:$0xff]  ;;  %v98_v47 = vld [vmem:[#allocation5 + $0x128] sm:$0xff]  ;;  %v96_v48 = vld [vmem:[#allocation5 + $0x118] sm:$0xff]  ;;  %v799_v50 = vpack.c.bf16 %v89_v42, %v85_v41 }
  0x43   :  { %v100_v49 = vld [vmem:[#allocation5 + $0x138] sm:$0xff]  ;;  %v863_v51 = vpack.c.bf16 %v91_v45, %v87_v44  ;;  %v801_v52 = vpack.c.bf16 %v98_v47, %v94_v46  ;;  %v93_v53 = vld [vmem:[#allocation5 + $0x100] sm:$0xff]  ;;  %v95_v55 = vld [vmem:[#allocation5 + $0x110] sm:$0xff]  ;;  %v191_v46 = vlaneseq }
  0x44   :  { %796 = vmatpush1.bf16.msra.mxu0 %v795_v34  ;;  %v97_v54 = vld [vmem:[#allocation5 + $0x120] sm:$0xff]  ;;  %v865_v56 = vpack.c.bf16 %v100_v49, %v96_v48  ;;  %v99_v57 = vld [vmem:[#allocation5 + $0x130] sm:$0xff]  ;;  %v102_v58 = vld [vmem:[#allocation5 + $0x148] sm:$0xff] }
  0x45   :  { %860 = vmatpush1.bf16.msra.mxu1 %v859_v38  ;;  %798 = vmatprep.subr.bf16.mxu0 %v797_v39  ;;  %v106_v59 = vld [vmem:[#allocation5 + $0x168] sm:$0xff]  ;;  %v104_v60 = vld [vmem:[#allocation5 + $0x158] sm:$0xff]  ;;  %v803_v62 = vpack.c.bf16 %v97_v54, %v93_v53  ;;  %v867_v63 = vpack.c.bf16 %v99_v57, %v95_v55  ;;  %v101_v1 = vld [vmem:[#allocation5 + $0x140] sm:$0xff] }
  0x46   :  { %862 = vmatprep.subr.bf16.mxu1 %v861_v43  ;;  %v108_v61 = vld [vmem:[#allocation5 + $0x178] sm:$0xff]  ;;  %v805_v0 = vpack.c.bf16 %v106_v59, %v102_v58  ;;  %v105_v2 = vld [vmem:[#allocation5 + $0x160] sm:$0xff]  ;;  %v103_v3 = vld [vmem:[#allocation5 + $0x150] sm:$0xff]  ;;  %v1171_v59 = vshrl.u32 %v191_v46, 7 }
  0x47   :  { %v869_v4 = vpack.c.bf16 %v108_v61, %v104_v60  ;;  %v107_v5 = vld [vmem:[#allocation5 + $0x170] sm:$0xff]  ;;  %v110_v6 = vld [vmem:[#allocation5 + $0x188] sm:$0xff]  ;;  %v112_v8 = vld [vmem:[#allocation5 + $0x198] sm:$0xff]  ;;  %v807_v10 = vpack.c.bf16 %v105_v2, %v101_v1 }
  0x48   :  { %800 = vmatpush1.bf16.msra.mxu0 %v799_v50  ;;  %v114_v7 = vld [vmem:[#allocation5 + $0x1a8] sm:$0xff]  ;;  %v116_v9 = vld [vmem:[#allocation5 + $0x1b8] sm:$0xff]  ;;  %v871_v11 = vpack.c.bf16 %v107_v5, %v103_v3  ;;  %v109_v13 = vld [vmem:[#allocation5 + $0x180] sm:$0xff] }
  0x49   :  { %864 = vmatpush1.bf16.msra.mxu1 %v863_v51  ;;  %802 = vmatprep.subr.bf16.mxu0 %v801_v52  ;;  %v809_v12 = vpack.c.bf16 %v114_v7, %v110_v6  ;;  %v113_v14 = vld [vmem:[#allocation5 + $0x1a0] sm:$0xff]  ;;  %v111_v15 = vld [vmem:[#allocation5 + $0x190] sm:$0xff]  ;;  %v873_v16 = vpack.c.bf16 %v116_v9, %v112_v8  ;;  %v118_v18 = vld [vmem:[#allocation5 + $0x1c8] sm:$0xff]  ;;  %v197_v8 = vsub.s32 1, %v1171_v59 }
  0x4a   :  { %866 = vmatprep.subr.bf16.mxu1 %v865_v56  ;;  %v115_v17 = vld [vmem:[#allocation5 + $0x1b0] sm:$0xff]  ;;  %v122_v19 = vld [vmem:[#allocation5 + $0x1e8] sm:$0xff]  ;;  %v120_v20 = vld [vmem:[#allocation5 + $0x1d8] sm:$0xff]  ;;  %v811_v22 = vpack.c.bf16 %v113_v14, %v109_v13 }
  0x4b   :  { %v124_v21 = vld [vmem:[#allocation5 + $0x1f8] sm:$0xff]  ;;  %v875_v23 = vpack.c.bf16 %v115_v17, %v111_v15  ;;  %v813_v24 = vpack.c.bf16 %v122_v19, %v118_v18  ;;  %v117_v25 = vld [vmem:[#allocation5 + $0x1c0] sm:$0xff]  ;;  %v119_v27 = vld [vmem:[#allocation5 + $0x1d0] sm:$0xff] }
  0x4c   :  { %804 = vmatpush1.bf16.msra.mxu0 %v803_v62  ;;  %v121_v26 = vld [vmem:[#allocation5 + $0x1e0] sm:$0xff]  ;;  %v877_v28 = vpack.c.bf16 %v124_v21, %v120_v20  ;;  %v123_v29 = vld [vmem:[#allocation5 + $0x1f0] sm:$0xff]  ;;  %v126_v30 = vld [vmem:[#allocation5 + $0x208] sm:$0xff] }
  0x4d   :  { %868 = vmatpush1.bf16.msra.mxu1 %v867_v63  ;;  %806 = vmatprep.subr.bf16.mxu0 %v805_v0  ;;  %v130_v31 = vld [vmem:[#allocation5 + $0x228] sm:$0xff]  ;;  %v128_v32 = vld [vmem:[#allocation5 + $0x218] sm:$0xff]  ;;  %v815_v34 = vpack.c.bf16 %v121_v26, %v117_v25  ;;  %v879_v35 = vpack.c.bf16 %v123_v29, %v119_v27  ;;  %v125_v37 = vld [vmem:[#allocation5 + $0x200] sm:$0xff] }
  0x4e   :  { %870 = vmatprep.subr.bf16.mxu1 %v869_v4  ;;  %v132_v33 = vld [vmem:[#allocation5 + $0x238] sm:$0xff]  ;;  %v817_v36 = vpack.c.bf16 %v130_v31, %v126_v30  ;;  %v129_v38 = vld [vmem:[#allocation5 + $0x220] sm:$0xff]  ;;  %v127_v39 = vld [vmem:[#allocation5 + $0x210] sm:$0xff] }
  0x4f   :  { %v881_v40 = vpack.c.bf16 %v132_v33, %v128_v32  ;;  %v131_v41 = vld [vmem:[#allocation5 + $0x230] sm:$0xff]  ;;  %v134_v42 = vld [vmem:[#allocation5 + $0x248] sm:$0xff]  ;;  %v136_v44 = vld [vmem:[#allocation5 + $0x258] sm:$0xff]  ;;  %v819_v47 = vpack.c.bf16 %v129_v38, %v125_v37 }
  0x50   :  { %808 = vmatpush1.bf16.msra.mxu0 %v807_v10  ;;  %v138_v43 = vld [vmem:[#allocation5 + $0x268] sm:$0xff]  ;;  %v140_v45 = vld [vmem:[#allocation5 + $0x278] sm:$0xff]  ;;  %v883_v48 = vpack.c.bf16 %v131_v41, %v127_v39  ;;  %v133_v50 = vld [vmem:[#allocation5 + $0x240] sm:$0xff] }
  0x51   :  { %872 = vmatpush1.bf16.msra.mxu1 %v871_v11  ;;  %810 = vmatprep.subr.bf16.mxu0 %v809_v12  ;;  %v821_v49 = vpack.c.bf16 %v138_v43, %v134_v42  ;;  %v137_v51 = vld [vmem:[#allocation5 + $0x260] sm:$0xff]  ;;  %v135_v52 = vld [vmem:[#allocation5 + $0x250] sm:$0xff]  ;;  %v885_v53 = vpack.c.bf16 %v140_v45, %v136_v44  ;;  %v142_v55 = vld [vmem:[#allocation5 + $0x288] sm:$0xff] }
  0x52   :  { %874 = vmatprep.subr.bf16.mxu1 %v873_v16  ;;  %v139_v54 = vld [vmem:[#allocation5 + $0x270] sm:$0xff]  ;;  %v146_v56 = vld [vmem:[#allocation5 + $0x2a8] sm:$0xff]  ;;  %v144_v57 = vld [vmem:[#allocation5 + $0x298] sm:$0xff]  ;;  %v823_v60 = vpack.c.bf16 %v137_v51, %v133_v50 }
  0x53   :  { %v148_v58 = vld [vmem:[#allocation5 + $0x2b8] sm:$0xff]  ;;  %v887_v61 = vpack.c.bf16 %v139_v54, %v135_v52  ;;  %v825_v62 = vpack.c.bf16 %v146_v56, %v142_v55  ;;  %v141_v63 = vld [vmem:[#allocation5 + $0x280] sm:$0xff]  ;;  %v143_v1 = vld [vmem:[#allocation5 + $0x290] sm:$0xff] }
  0x54   :  { %812 = vmatpush1.bf16.msra.mxu0 %v811_v22  ;;  %v145_v0 = vld [vmem:[#allocation5 + $0x2a0] sm:$0xff]  ;;  %v889_v2 = vpack.c.bf16 %v148_v58, %v144_v57  ;;  %v147_v3 = vld [vmem:[#allocation5 + $0x2b0] sm:$0xff]  ;;  %v150_v4 = vld [vmem:[#allocation5 + $0x2c8] sm:$0xff] }
  0x55   :  { %876 = vmatpush1.bf16.msra.mxu1 %v875_v23  ;;  %814 = vmatprep.subr.bf16.mxu0 %v813_v24  ;;  %v154_v5 = vld [vmem:[#allocation5 + $0x2e8] sm:$0xff]  ;;  %v152_v6 = vld [vmem:[#allocation5 + $0x2d8] sm:$0xff]  ;;  %v827_v9 = vpack.c.bf16 %v145_v0, %v141_v63  ;;  %v149_v10 = vld [vmem:[#allocation5 + $0x2c0] sm:$0xff]  ;;  %v891_v11 = vpack.c.bf16 %v147_v3, %v143_v1 }
  0x56   :  { %878 = vmatprep.subr.bf16.mxu1 %v877_v28  ;;  %v156_v7 = vld [vmem:[#allocation5 + $0x2f8] sm:$0xff]  ;;  %v829_v12 = vpack.c.bf16 %v154_v5, %v150_v4  ;;  %v153_v13 = vld [vmem:[#allocation5 + $0x2e0] sm:$0xff]  ;;  %v151_v14 = vld [vmem:[#allocation5 + $0x2d0] sm:$0xff] }
  0x57   :  { %v155_v15 = vld [vmem:[#allocation5 + $0x2f0] sm:$0xff]  ;;  %v893_v16 = vpack.c.bf16 %v156_v7, %v152_v6  ;;  %v158_v17 = vld [vmem:[#allocation5 + $0x308] sm:$0xff]  ;;  %v1174_v19 = vld [vmem:[#allocation2] sm:$0x3]  ;;  %v831_v23 = vpack.c.bf16 %v153_v13, %v149_v10  ;;  %v193_v7 = vsub.s32 0, %v1171_v59 }
  0x58   :  { %816 = vmatpush1.bf16.msra.mxu0 %v815_v34  ;;  %v162_v18 = vld [vmem:[#allocation5 + $0x328] sm:$0xff]  ;;  %v160_v20 = vld [vmem:[#allocation5 + $0x318] sm:$0xff]  ;;  %v198_v22 = vrot.slane %v1174_v19, %v197_v8  ;;  %v895_v24 = vpack.c.bf16 %v155_v15, %v151_v14  ;;  %v157_v26 = vld [vmem:[#allocation5 + $0x300] sm:$0xff] }
  0x59   :  { %880 = vmatpush1.bf16.msra.mxu1 %v879_v35  ;;  %818 = vmatprep.subr.bf16.mxu0 %v817_v36  ;;  %v164_v21 = vld [vmem:[#allocation5 + $0x338] sm:$0xff]  ;;  %v833_v25 = vpack.c.bf16 %v162_v18, %v158_v17  ;;  %v161_v27 = vld [vmem:[#allocation5 + $0x320] sm:$0xff]  ;;  %v159_v28 = vld [vmem:[#allocation5 + $0x310] sm:$0xff] }
  0x5a   :  { %882 = vmatprep.subr.bf16.mxu1 %v881_v40  ;;  %v897_v29 = vpack.c.bf16 %v164_v21, %v160_v20  ;;  %v163_v30 = vld [vmem:[#allocation5 + $0x330] sm:$0xff]  ;;  %v166_v31 = vld [vmem:[#allocation5 + $0x348] sm:$0xff]  ;;  %286 = vmatprep.mubr.f32.mxu0 %v198_v22  ;;  %v168_v33 = vld [vmem:[#allocation5 + $0x358] sm:$0xff]  ;;  %v835_v35 = vpack.c.bf16 %v161_v27, %v157_v26 }
  0x5b   :  { %v170_v32 = vld [vmem:[#allocation5 + $0x368] sm:$0xff]  ;;  %v172_v34 = vld [vmem:[#allocation5 + $0x378] sm:$0xff]  ;;  %357 = vmatprep.mubr.f32.mxu1 %v198_v22  ;;  %v899_v36 = vpack.c.bf16 %v163_v30, %v159_v28  ;;  %v165_v38 = vld [vmem:[#allocation5 + $0x340] sm:$0xff]  ;;  %v194_v22 = vrot.slane %v1174_v19, %v193_v7 }
  0x5c   :  { %820 = vmatpush1.bf16.msra.mxu0 %v819_v47  ;;  %v837_v37 = vpack.c.bf16 %v170_v32, %v166_v31  ;;  %v169_v39 = vld [vmem:[#allocation5 + $0x360] sm:$0xff]  ;;  %v167_v40 = vld [vmem:[#allocation5 + $0x350] sm:$0xff]  ;;  %v901_v41 = vpack.c.bf16 %v172_v34, %v168_v33  ;;  %v174_v43 = vld [vmem:[#allocation5 + $0x388] sm:$0xff] }
  0x5d   :  { %884 = vmatpush1.bf16.msra.mxu1 %v883_v48  ;;  %822 = vmatprep.subr.bf16.mxu0 %v821_v49  ;;  %v171_v42 = vld [vmem:[#allocation5 + $0x370] sm:$0xff]  ;;  %v178_v44 = vld [vmem:[#allocation5 + $0x3a8] sm:$0xff]  ;;  %v176_v45 = vld [vmem:[#allocation5 + $0x398] sm:$0xff]  ;;  %v839_v48 = vpack.c.bf16 %v169_v39, %v165_v38 }
  0x5e   :  { %886 = vmatprep.subr.bf16.mxu1 %v885_v53  ;;  %v180_v47 = vld [vmem:[#allocation5 + $0x3b8] sm:$0xff]  ;;  %v903_v49 = vpack.c.bf16 %v171_v42, %v167_v40  ;;  %v841_v50 = vpack.c.bf16 %v178_v44, %v174_v43  ;;  %v173_v51 = vld [vmem:[#allocation5 + $0x380] sm:$0xff]  ;;  %v175_v53 = vld [vmem:[#allocation5 + $0x390] sm:$0xff] }
  0x5f   :  { %v177_v52 = vld [vmem:[#allocation5 + $0x3a0] sm:$0xff]  ;;  %v905_v54 = vpack.c.bf16 %v180_v47, %v176_v45  ;;  %v179_v55 = vld [vmem:[#allocation5 + $0x3b0] sm:$0xff]  ;;  %v182_v56 = vld [vmem:[#allocation5 + $0x3c8] sm:$0xff] }
  0x60   :  { %824 = vmatpush1.bf16.msra.mxu0 %v823_v60  ;;  %v186_v57 = vld [vmem:[#allocation5 + $0x3e8] sm:$0xff]  ;;  %v184_v58 = vld [vmem:[#allocation5 + $0x3d8] sm:$0xff]  ;;  %v181_v0 = vld [vmem:[#allocation5 + $0x3c0] sm:$0xff] }
  0x61   :  { %888 = vmatpush1.bf16.msra.mxu1 %v887_v61  ;;  %826 = vmatprep.subr.bf16.mxu0 %v825_v62  ;;  %v188_v60 = vld [vmem:[#allocation5 + $0x3f8] sm:$0xff]  ;;  %v843_v61 = vpack.c.bf16 %v177_v52, %v173_v51  ;;  %v907_v62 = vpack.c.bf16 %v179_v55, %v175_v53  ;;  %v845_v63 = vpack.c.bf16 %v186_v57, %v182_v56  ;;  %v185_v1 = vld [vmem:[#allocation5 + $0x3e0] sm:$0xff]  ;;  %v187_v4 = vld [vmem:[#allocation5 + $0x3f0] sm:$0xff] }
  0x62   :  { %890 = vmatprep.subr.bf16.mxu1 %v889_v2  ;;  %v183_v2 = vld [vmem:[#allocation5 + $0x3d0] sm:$0xff]  ;;  %v909_v3 = vpack.c.bf16 %v188_v60, %v184_v58  ;;  %v384_v5 = vld [vmem:[#allocation7 + $0x80] sm:$0xff]  ;;  %v385_v6 = vld [vmem:[#allocation7 + $0x88] sm:$0xff] }
  0x63   :  { %v417_v10 = vld [vmem:[#allocation7 + $0x188] sm:$0xff]  ;;  %v913_v13 = vpack.c.bf16 %v385_v6, %v384_v5  ;;  %v368_v14 = vld [vmem:[#allocation7] sm:$0xff]  ;;  %v386_v20 = vld [vmem:[#allocation7 + $0x90] sm:$0xff] }
  0x64   :  { %828 = vmatpush1.bf16.msra.mxu0 %v827_v9  ;;  %v416_v9 = vld [vmem:[#allocation7 + $0x180] sm:$0xff]  ;;  %v369_v15 = vld [vmem:[#allocation7 + $0x8] sm:$0xff]  ;;  %v387_v21 = vld [vmem:[#allocation7 + $0x98] sm:$0xff] }
  0x65   :  { %892 = vmatpush1.bf16.msra.mxu1 %v891_v11  ;;  %830 = vmatprep.subr.bf16.mxu0 %v829_v12  ;;  %v847_v11 = vpack.c.bf16 %v185_v1, %v181_v0  ;;  %v911_v12 = vpack.c.bf16 %v187_v4, %v183_v2  ;;  %v945_v17 = vpack.c.bf16 %v417_v10, %v416_v9  ;;  %v401_v18 = vld [vmem:[#allocation7 + $0x108] sm:$0xff]  ;;  %v370_v28 = vld [vmem:[#allocation7 + $0x10] sm:$0xff]  ;;  %v403_v32 = vld [vmem:[#allocation7 + $0x118] sm:$0xff] }
  0x66   :  { %894 = vmatprep.subr.bf16.mxu1 %v893_v16  ;;  %v400_v16 = vld [vmem:[#allocation7 + $0x100] sm:$0xff]  ;;  %v917_v27 = vpack.c.bf16 %v387_v21, %v386_v20  ;;  %v402_v30 = vld [vmem:[#allocation7 + $0x110] sm:$0xff]  ;;  %v389_v34 = vld [vmem:[#allocation7 + $0xa8] sm:$0xff] }
  0x67   :  { %v947_v26 = vpack.c.bf16 %v401_v18, %v400_v16  ;;  %v388_v33 = vld [vmem:[#allocation7 + $0xa0] sm:$0xff]  ;;  %v373_v40 = vld [vmem:[#allocation7 + $0x28] sm:$0xff]  ;;  %v390_v44 = vld [vmem:[#allocation7 + $0xb0] sm:$0xff] }
  0x68   :  { %832 = vmatpush1.bf16.msra.mxu0 %v831_v23  ;;  %v418_v23 = vld [vmem:[#allocation7 + $0x190] sm:$0xff]  ;;  %v921_v38 = vpack.c.bf16 %v389_v34, %v388_v33  ;;  %v372_v39 = vld [vmem:[#allocation7 + $0x20] sm:$0xff]  ;;  %v405_v43 = vld [vmem:[#allocation7 + $0x128] sm:$0xff] }
  0x69   :  { %896 = vmatpush1.bf16.msra.mxu1 %v895_v24  ;;  %834 = vmatprep.subr.bf16.mxu0 %v833_v25  ;;  %v419_v24 = vld [vmem:[#allocation7 + $0x198] sm:$0xff]  ;;  %v915_v25 = vpack.c.bf16 %v369_v15, %v368_v14  ;;  %v422_v47 = vld [vmem:[#allocation7 + $0x1b0] sm:$0xff]  ;;  %v392_v57 = vld [vmem:[#allocation7 + $0xc0] sm:$0xff] }
  0x6a   :  { %898 = vmatprep.subr.bf16.mxu1 %v897_v29  ;;  %v371_v29 = vld [vmem:[#allocation7 + $0x18] sm:$0xff]  ;;  %v949_v31 = vpack.c.bf16 %v419_v24, %v418_v23  ;;  %v374_v52 = vld [vmem:[#allocation7 + $0x30] sm:$0xff]  ;;  %v393_v58 = vld [vmem:[#allocation7 + $0xc8] sm:$0xff] }
  0x6b   :  { %v919_v19 = vpack.c.bf16 %v371_v29, %v370_v28  ;;  %v391_v45 = vld [vmem:[#allocation7 + $0xb8] sm:$0xff]  ;;  %v424_v60 = vld [vmem:[#allocation7 + $0x1c0] sm:$0xff]  ;;  %v929_v0 = vpack.c.bf16 %v393_v58, %v392_v57  ;;  %v377_v2 = vld [vmem:[#allocation7 + $0x48] sm:$0xff] }
  0x6c   :  { %836 = vmatpush1.bf16.msra.mxu0 %v835_v35  ;;  %v420_v35 = vld [vmem:[#allocation7 + $0x1a0] sm:$0xff]  ;;  %v925_v51 = vpack.c.bf16 %v391_v45, %v390_v44  ;;  %v375_v53 = vld [vmem:[#allocation7 + $0x38] sm:$0xff]  ;;  %v409_v5 = vld [vmem:[#allocation7 + $0x148] sm:$0xff] }
  0x6d   :  { %900 = vmatpush1.bf16.msra.mxu1 %v899_v36  ;;  %838 = vmatprep.subr.bf16.mxu0 %v837_v37  ;;  %v421_v36 = vld [vmem:[#allocation7 + $0x1a8] sm:$0xff]  ;;  %v951_v37 = vpack.c.bf16 %v403_v32, %v402_v30  ;;  %v407_v56 = vld [vmem:[#allocation7 + $0x138] sm:$0xff]  ;;  %v376_v1 = vld [vmem:[#allocation7 + $0x40] sm:$0xff] }
  0x6e   :  { %902 = vmatprep.subr.bf16.mxu1 %v901_v41  ;;  %v404_v41 = vld [vmem:[#allocation7 + $0x120] sm:$0xff]  ;;  %v953_v42 = vpack.c.bf16 %v421_v36, %v420_v35  ;;  %v394_v6 = vld [vmem:[#allocation7 + $0xd0] sm:$0xff]  ;;  %v395_v9 = vld [vmem:[#allocation7 + $0xd8] sm:$0xff] }
  0x6f   :  { %v426_v10 = vld [vmem:[#allocation7 + $0x1d0] sm:$0xff]  ;;  %v933_v14 = vpack.c.bf16 %v395_v9, %v394_v6  ;;  %v379_v16 = vld [vmem:[#allocation7 + $0x58] sm:$0xff]  ;;  %v396_v21 = vld [vmem:[#allocation7 + $0xe0] sm:$0xff] }
  0x70   :  { %840 = vmatpush1.bf16.msra.mxu0 %v839_v48  ;;  %v423_v48 = vld [vmem:[#allocation7 + $0x1b8] sm:$0xff]  ;;  %v378_v15 = vld [vmem:[#allocation7 + $0x50] sm:$0xff]  ;;  %v428_v23 = vld [vmem:[#allocation7 + $0x1e0] sm:$0xff] }
  0x71   :  { %904 = vmatpush1.bf16.msra.mxu1 %v903_v49  ;;  %842 = vmatprep.subr.bf16.mxu0 %v841_v50  ;;  %v923_v49 = vpack.c.bf16 %v373_v40, %v372_v39  ;;  %v955_v50 = vpack.c.bf16 %v405_v43, %v404_v41  ;;  %v957_v55 = vpack.c.bf16 %v423_v48, %v422_v47  ;;  %v411_v20 = vld [vmem:[#allocation7 + $0x158] sm:$0xff]  ;;  %v429_v24 = vld [vmem:[#allocation7 + $0x1e8] sm:$0xff]  ;;  %v380_v29 = vld [vmem:[#allocation7 + $0x60] sm:$0xff]  ;;  %v212_v48 = vsub.s32 2, %v1171_v59 }
  0x72   :  { %906 = vmatprep.subr.bf16.mxu1 %v905_v54  ;;  %v406_v54 = vld [vmem:[#allocation7 + $0x130] sm:$0xff]  ;;  %v969_v28 = vpack.c.bf16 %v429_v24, %v428_v23  ;;  %v381_v30 = vld [vmem:[#allocation7 + $0x68] sm:$0xff]  ;;  %v399_v36 = vld [vmem:[#allocation7 + $0xf8] sm:$0xff] }
  0x73   :  { %v939_v32 = vpack.c.bf16 %v381_v30, %v380_v29  ;;  %v413_v33 = vld [vmem:[#allocation7 + $0x168] sm:$0xff]  ;;  %v398_v35 = vld [vmem:[#allocation7 + $0xf0] sm:$0xff]  ;;  %v383_v40 = vld [vmem:[#allocation7 + $0x78] sm:$0xff] }
  0x74   :  { %844 = vmatpush1.bf16.msra.mxu0 %v843_v61  ;;  %v425_v61 = vld [vmem:[#allocation7 + $0x1c8] sm:$0xff]  ;;  %v382_v39 = vld [vmem:[#allocation7 + $0x70] sm:$0xff]  ;;  %v415_v44 = vld [vmem:[#allocation7 + $0x178] sm:$0xff] }
  0x75   :  { %908 = vmatpush1.bf16.msra.mxu1 %v907_v62  ;;  %846 = vmatprep.subr.bf16.mxu0 %v845_v63  ;;  %v927_v62 = vpack.c.bf16 %v375_v53, %v374_v52  ;;  %v959_v63 = vpack.c.bf16 %v407_v56, %v406_v54  ;;  %v961_v4 = vpack.c.bf16 %v425_v61, %v424_v60  ;;  %v414_v43 = vld [vmem:[#allocation7 + $0x170] sm:$0xff] }
  0x76   :  { %910 = vmatprep.subr.bf16.mxu1 %v909_v3  ;;  %v408_v3 = vld [vmem:[#allocation7 + $0x140] sm:$0xff]  ;;  %v975_v45 = vpack.c.bf16 %v415_v44, %v414_v43  ;;  %v189_v47 = vld [vmem:[%s1292_s2] sm:$0xf] }
  0x77   :  { %v209_v52 = vrot.slane %v189_v47, %v197_v8  ;;  %v432_v8 = vld [vmem:[%s1294_s4] sm:$0x1]  ;;  %s1096_s4 = smov 96  }
  0x78   :  { %848 = vmatpush1.bf16.msra.mxu0 %v847_v11  ;;  %v427_v11 = vld [vmem:[#allocation7 + $0x1d8] sm:$0xff] }
  0x79   :  { %912 = vmatpush1.bf16.msra.mxu1 %v911_v12  ;;  %914 = vmatprep.subr.bf16.mxu0 %v913_v13  ;;  %v931_v12 = vpack.c.bf16 %v377_v2, %v376_v1  ;;  %v963_v13 = vpack.c.bf16 %v409_v5, %v408_v3  ;;  %v965_v18 = vpack.c.bf16 %v427_v11, %v426_v10 }
  0x7a   :  { %946 = vmatprep.subr.bf16.mxu1 %v945_v17  ;;  %v410_v17 = vld [vmem:[#allocation7 + $0x150] sm:$0xff] }
  0x7b   :  { %287 = vmatmul.mubr.f32.vlgmr.msra.gmra.mrb[0].mxu0 %v194_v22 }
  0x7c   :  { %358 = vmatmul.mubr.f32.vlgmr.msra.gmra.mrb[0].mxu1 %v194_v22  ;;  %916 = vmatpush3.bf16.msra.mxu0 %v915_v25  ;;  %v397_v22 = vld [vmem:[#allocation7 + $0xe8] sm:$0xff]  ;;  %v935_v25 = vpack.c.bf16 %v379_v16, %v378_v15 }
  0x7d   :  { %948 = vmatpush3.bf16.msra.mxu1 %v947_v26  ;;  %918 = vmatprep.subr.bf16.mxu0 %v917_v27  ;;  %v967_v26 = vpack.c.bf16 %v411_v20, %v410_v17  ;;  %v937_v27 = vpack.c.bf16 %v397_v22, %v396_v21  ;;  %v1197_v20 = vand.u32 127, %v191_v46 }
  0x7e   :  { %950 = vmatprep.subr.bf16.mxu1 %v949_v31  ;;  %v412_v31 = vld [vmem:[#allocation7 + $0x160] sm:$0xff] }
  0x7f   :  { %v971_v34 = vpack.c.bf16 %v413_v33, %v412_v31  ;;  %vm587_vm8 = vcmp.ge.s32.totalorder %v1197_v20, 16  ;;  %vm588_vm9 = vcmp.lt.s32.totalorder %v1197_v20, 32  ;;  %vm595_vm10 = vcmp.ge.s32.totalorder %v1197_v20, 32 }
  0x80   :  { %920 = vmatpush3.bf16.msra.mxu0 %v919_v19  ;;  %v430_v19 = vld [vmem:[#allocation7 + $0x1f0] sm:$0xff]  ;;  %vm596_vm11 = vcmp.lt.s32.totalorder %v1197_v20, 48  ;;  %vm580_vm12 = vcmp.lt.s32.totalorder %v1197_v20, 16  ;;  %vm603_vm13 = vcmp.ge.s32.totalorder %v1197_v20, 48  ;;  %vm604_vm14 = vcmp.lt.s32.totalorder %v1197_v20, 64  ;;  %vm1206_vm15 = vmand %vm587_vm8, %vm588_vm9 }
  0x81   :  { %952 = vmatpush3.bf16.msra.mxu1 %v951_v37  ;;  %922 = vmatprep.subr.bf16.mxu0 %v921_v38  ;;  %v941_v37 = vpack.c.bf16 %v399_v36, %v398_v35  ;;  %v431_v38 = vld [vmem:[#allocation7 + $0x1f8] sm:$0xff]  ;;  %vm627_vm8 = vcmp.ge.s32.totalorder %v1197_v20, 96  ;;  %vm628_vm9 = vcmp.lt.s32.totalorder %v1197_v20, 112 }
  0x82   :  { %954 = vmatprep.subr.bf16.mxu1 %v953_v42  ;;  %v973_v41 = vpack.c.bf16 %v431_v38, %v430_v19  ;;  %v943_v42 = vpack.c.bf16 %v383_v40, %v382_v39 }
  0x84   :  { %924 = vmatpush3.bf16.msra.mxu0 %v923_v49  ;;  %v216_v49 = vsub.s32 3, %v1171_v59 }
  0x85   :  { %956 = vmatpush3.bf16.msra.mxu1 %v955_v50  ;;  %926 = vmatprep.subr.bf16.mxu0 %v925_v51  ;;  %v205_v50 = vrot.slane %v189_v47, %v193_v7  ;;  %v213_v51 = vrot.slane %v189_v47, %v212_v48 }
  0x86   :  { %958 = vmatprep.subr.bf16.mxu1 %v957_v55  ;;  %v217_v53 = vrot.slane %v189_v47, %v216_v49 }
  0x88   :  { %928 = vmatpush3.bf16.msra.mxu0 %v927_v62 }
  0x89   :  { %960 = vmatpush3.bf16.msra.mxu1 %v959_v63  ;;  %930 = vmatprep.subr.bf16.mxu0 %v929_v0 }
  0x8a   :  { %962 = vmatprep.subr.bf16.mxu1 %v961_v4 }
  0x8c   :  { %932 = vmatpush3.bf16.msra.mxu0 %v931_v12 }
  0x8d   :  { %964 = vmatpush3.bf16.msra.mxu1 %v963_v13  ;;  %934 = vmatprep.subr.bf16.mxu0 %v933_v14 }
  0x8e   :  { %966 = vmatprep.subr.bf16.mxu1 %v965_v18 }
  0x90   :  { %936 = vmatpush3.bf16.msra.mxu0 %v935_v25 }
  0x91   :  { %968 = vmatpush3.bf16.msra.mxu1 %v967_v26  ;;  %938 = vmatprep.subr.bf16.mxu0 %v937_v27 }
  0x92   :  { %970 = vmatprep.subr.bf16.mxu1 %v969_v28 }
  0x94   :  { %940 = vmatpush3.bf16.msra.mxu0 %v939_v32 }
  0x95   :  { %972 = vmatpush3.bf16.msra.mxu1 %v971_v34  ;;  %942 = vmatprep.subr.bf16.mxu0 %v941_v37 }
  0x96   :  { %974 = vmatprep.subr.bf16.mxu1 %v973_v41 }
  0x98   :  { %944 = vmatpush3.bf16.msra.mxu0 %v943_v42 }
  0x99   :  { %976 = vmatpush3.bf16.msra.mxu1 %v975_v45 }
 0x14e   :  { %v288_v54 = vpop.f32.mrb[0].mxu0 }
 0x14f   :  { %v289_v55 = vadd.f32 %v288_v54, %v205_v50  ;;  %v359_v56 = vpop.f32.mrb[0].mxu1  ;;  %v290_v57 = vpop.f32.mrb[1].mxu0 }
 0x150   :  { %v360_v58 = vadd.f32 %v359_v56, %v213_v51  ;;  %v291_v60 = vadd.f32 %v290_v57, %v209_v52  ;;  %v361_v61 = vpop.f32.mrb[1].mxu1 }
 0x151   :  { %v362_v62 = vadd.f32 %v361_v61, %v217_v53  ;;  %v364_v1 = vmax.f32 %v289_v55, 0.0 }
 0x152   :  { %v366_v63 = vmax.f32 %v360_v58, 0.0  ;;  %v365_v0 = vmax.f32 %v291_v60, 0.0 }
 0x153   :  { %v367_v2 = vmax.f32 %v362_v62, 0.0 }
 0x154   :  { %497 = vmatprep.mubr.f32.mxu0 %v365_v0 }
 0x155   :  { %567 = vmatprep.mubr.f32.mxu1 %v367_v2  ;;  %498 = vmatmul.mubr.f32.vlgmr.msra.gmra.mrb[2].mxu0 %v364_v1 }
 0x156   :  { %568 = vmatmul.mubr.f32.vlgmr.msra.gmra.mrb[2].mxu1 %v366_v63 }
 0x228   :  { %v747_v7 = vpop.f32.mrb[2].mxu0 }
 0x229   :  { %v782_v59 = vpop.f32.mrb[2].mxu1  ;;  %v748_v3 = vpop.f32.mrb[3].mxu0 }
 0x22a   :  { %v749_v4 = vadd.f32 %v748_v3, %v747_v7  ;;  %v783_v5 = vpop.f32.mrb[3].mxu1 }
 0x22b   :  { %v784_v6 = vadd.f32 %v783_v5, %v782_v59 }
 0x22c   :  { %v500_v9 = vadd.f32 %v749_v4, %v432_v8 }
 0x22e   :  { %v570_v10 = vadd.f32 %v784_v6, %v500_v9 }
 0x230   :  { %v592_v11 = vsel %vm591_vm0, %v570_v10, -inf  ;;  %v576_v12 = vsel %vm575_vm1, %v570_v10, -inf  ;;  %v600_v13 = vsel %vm599_vm2, %v570_v10, -inf  ;;  %v584_v14 = vsel %vm583_vm3, %v570_v10, -inf  ;;  %vm1210_vm0 = vmand %vm595_vm10, %vm596_vm11 }
 0x231   :  { %593 = vmax.xlane.f32.xlu1 %v592_v11  ;;  %577 = vmax.xlane.f32.xlu0 %v576_v12  ;;  %v616_v15 = vsel %vm615_vm4, %v570_v10, -inf  ;;  %v608_v16 = vsel %vm607_vm5, %v570_v10, -inf  ;;  %v632_v17 = vsel %vm631_vm6, %v570_v10, -inf  ;;  %v624_v18 = vsel %vm623_vm7, %v570_v10, -inf  ;;  %vm1218_vm4 = vmand %vm603_vm13, %vm604_vm14 }
 0x232   :  { %vm611_vm2 = vcmp.ge.s32.totalorder %v1197_v20, 64  ;;  %vm612_vm3 = vcmp.lt.s32.totalorder %v1197_v20, 80  ;;  %vm619_vm6 = vcmp.ge.s32.totalorder %v1197_v20, 80  ;;  %vm620_vm7 = vcmp.lt.s32.totalorder %v1197_v20, 96  ;;  %vm1242_vm11 = vmand %vm627_vm8, %vm628_vm9 }
 0x233   :  { %vm1226_vm5 = vmand %vm611_vm2, %vm612_vm3  ;;  %vm635_vm13 = vcmp.ge.s32.totalorder %v1197_v20, 112 }
 0x234   :  { %vm1238_vm10 = vmand %vm619_vm6, %vm620_vm7 }
 0x235   :  { %601 = vmax.xlane.f32.xlu1 %v600_v13  ;;  %585 = vmax.xlane.f32.xlu0 %v584_v14 }
 0x239   :  { %617 = vmax.xlane.f32.xlu1 %v616_v15  ;;  %609 = vmax.xlane.f32.xlu0 %v608_v16 }
 0x23d   :  { %633 = vmax.xlane.f32.xlu1 %v632_v17  ;;  %625 = vmax.xlane.f32.xlu0 %v624_v18 }
 0x2be   :  { %v594_v21 = vpop.xlane.xlu1 %593  ;;  %v578_v22 = vpop.xlane.xlu0 %577 }
 0x2bf   :  { %v582_v24 = vsel %vm580_vm12, %v578_v22, 0.0 }
 0x2c2   :  { %v602_v25 = vpop.xlane.xlu1 %601  ;;  %v586_v26 = vpop.xlane.xlu0 %585 }
 0x2c3   :  { %v590_v28 = vsel %vm1206_vm15, %v586_v26, %v582_v24 }
 0x2c4   :  { %v598_v29 = vsel %vm1210_vm0, %v594_v21, %v590_v28 }
 0x2c5   :  { %v606_v31 = vsel %vm1218_vm4, %v602_v25, %v598_v29 }
 0x2c6   :  { %v618_v32 = vpop.xlane.xlu1 %617  ;;  %v610_v33 = vpop.xlane.xlu0 %609 }
 0x2c7   :  { %v614_v34 = vsel %vm1226_vm5, %v610_v33, %v606_v31 }
 0x2c8   :  { %v622_v37 = vsel %vm1238_vm10, %v618_v32, %v614_v34 }
 0x2ca   :  { %v634_v19 = vpop.xlane.xlu1 %633  ;;  %v626_v38 = vpop.xlane.xlu0 %625 }
 0x2cb   :  { %v630_v39 = vsel %vm1242_vm11, %v626_v38, %v622_v37 }
 0x2cc   :  { %v638_v40 = vsel %vm635_vm13, %v634_v19, %v630_v39 }
 0x2cd   :  { %v639_v41 = vsub.f32 %v570_v10, %v638_v40 }
 0x2cf   :  { %v640_v42 = vmul.f32 1.442695, %v639_v41 }
 0x2d1   :  { %991 = vpow2.f32 %v640_v42 }
 0x2db   :  { %v992_v43 = vpop.eup %991 }
 0x2dc   :  { %654 = vrot.lane.b32.xlu0 %v992_v43, %s1096_s4  ;;  %647 = vrot.lane.b32.xlu1 %v992_v43, %s1097_s9  ;;  %v642_v44 = vsel %vm575_vm1, %v992_v43, 0.0 }
 0x2e0   :  { %661 = vrot.lane.b32.xlu0 %v992_v43, %s1098_s10 }
 0x2e4   :  { %668 = vrot.lane.b32.xlu0 %v992_v43, %s1099_s11 }
 0x2e8   :  { %675 = vrot.lane.b32.xlu0 %v992_v43, %s1100_s12 }
 0x2ec   :  { %682 = vrot.lane.b32.xlu0 %v992_v43, %s1091_s29  ;;  %s1102_s29 = smov [#allocation8]  }
 0x2ed   :  { %s705_s14 = sshll.u32 %s1102_s29, 4  ;;  %s706_s14 = int_to_ptr.vmem [resolvable:$true] %s705_s14 }
 0x2ee   :  { %s1061_s15 = scalar_lea.vmem %s706_s14, 16  ;;  %s1065_s16 = scalar_lea.vmem %s706_s14, 32 }
 0x2ef   :  { %p1062_p10 = scmp.ne.s32.totalorder %s706_s14, %s1061_s15  ;;  %p1066_p11 = scmp.lt.s32.totalorder %s706_s14, %s706_s14 }
 0x2f0   :  { %689 = vrot.lane.b32.xlu0 %v992_v43, %s1101_s13  ;;  %p1067_p12 = scmp.lt.s32.totalorder %s1065_s16, %s1061_s15 }
 0x2f2   :  { %p1068_p13 = por %p1067_p12, %p1066_p11 }
 0x2f4   :  { %p1069_p0 = pnand %p1068_p13, %p1062_p10 }
 0x30f   :  { %643 = vadd.xlane.f32.xlu0 %v642_v44 }
 0x34e   :  { %v655_v45 = vpop.permute.xlu0 %654  ;;  %v648_v47 = vpop.permute.xlu1 %647 }
 0x34f   :  { %v657_v48 = vsel %vm575_vm1, %v655_v45, 0.0  ;;  %v650_v49 = vsel %vm575_vm1, %v648_v47, 0.0 }
 0x350   :  { %658 = vadd.xlane.f32.xlu1 %v657_v48  ;;  %651 = vadd.xlane.f32.xlu0 %v650_v49 }
 0x352   :  { %v662_v50 = vpop.permute.xlu0 %661 }
 0x353   :  { %v664_v51 = vsel %vm575_vm1, %v662_v50, 0.0 }
 0x354   :  { %665 = vadd.xlane.f32.xlu0 %v664_v51 }
 0x356   :  { %v669_v52 = vpop.permute.xlu0 %668 }
 0x357   :  { %v671_v53 = vsel %vm575_vm1, %v669_v52, 0.0 }
 0x358   :  { %672 = vadd.xlane.f32.xlu1 %v671_v53 }
 0x35a   :  { %v676_v54 = vpop.permute.xlu0 %675 }
 0x35b   :  { %v678_v55 = vsel %vm575_vm1, %v676_v54, 0.0 }
 0x35c   :  { %679 = vadd.xlane.f32.xlu1 %v678_v55 }
 0x35e   :  { %v683_v56 = vpop.permute.xlu0 %682 }
 0x35f   :  { %v685_v57 = vsel %vm575_vm1, %v683_v56, 0.0 }
 0x360   :  { %686 = vadd.xlane.f32.xlu1 %v685_v57 }
 0x362   :  { %v690_v58 = vpop.permute.xlu0 %689 }
 0x363   :  { %v692_v60 = vsel %vm575_vm1, %v690_v58, 0.0 }
 0x364   :  { %693 = vadd.xlane.f32.xlu1 %v692_v60 }
 0x39c   :  { %v644_v61 = vpop.xlane.xlu0 %643 }
 0x39d   :  { %v645_v1 = vsel %vm580_vm12, %v644_v61, 0.0 }
 0x3dd   :  { %v659_v62 = vpop.xlane.xlu1 %658  ;;  %v652_v63 = vpop.xlane.xlu0 %651 }
 0x3de   :  { %v653_v7 = vsel %vm1206_vm15, %v652_v63, %v645_v1 }
 0x3df   :  { %v660_v8 = vsel %vm1210_vm0, %v659_v62, %v653_v7 }
 0x3e1   :  { %v666_v59 = vpop.xlane.xlu0 %665 }
 0x3e2   :  { %v667_v4 = vsel %vm1218_vm4, %v666_v59, %v660_v8 }
 0x3e5   :  { %v673_v0 = vpop.xlane.xlu1 %672 }
 0x3e6   :  { %v674_v5 = vsel %vm1226_vm5, %v673_v0, %v667_v4 }
 0x3e9   :  { %v680_v2 = vpop.xlane.xlu1 %679 }
 0x3ea   :  { %v681_v6 = vsel %vm1238_vm10, %v680_v2, %v674_v5 }
 0x3ed   :  { %v687_v3 = vpop.xlane.xlu1 %686 }
 0x3ee   :  { %v688_v9 = vsel %vm1242_vm11, %v687_v3, %v681_v6 }
 0x3f1   :  { %v694_v10 = vpop.xlane.xlu1 %693 }
 0x3f2   :  { %v695_v11 = vsel %vm635_vm13, %v694_v10, %v688_v9 }
 0x3f3   :  { %993 = vrcp.f32 %v695_v11 }
 0x3fd   :  { %v994_v12 = vpop.eup %993 }
 0x3fe   :  { %v697_v13 = vmul.f32 %v994_v12, %v992_v43 }
 0x400   :  { %698 = vst [vmem:[#allocation8] sm:$0x1] %v697_v13 }
 0x401   :  { %1072 = shalt.err (!%p1069_p0)
}
 0x402   :  { %s1073_s18 = scalar_lea.hbm %s1295_s5, 16 }
 0x403   :  { %p1074_p1 = scmp.ne.s32.totalorder %s1295_s5, %s1073_s18  ;;  %p1077_p2 = scmp.lt.u32.totalorder %s1073_s18, %s1295_s5 }
 0x405   :  { %p1079_p3 = pnand %p1077_p2, %p1074_p1 }
 0x407   :  { %1082 = shalt.err (!%p1079_p3)
}
 0x408   :  { %708 = dma.vmem_to_hbm [thread:$0]  %s706_s14, 16, %s1295_s5, [#allocation4]  }
 0x409   :  { %1087 = dma.done.wait [#allocation4], 16  }
 0x40a   :  { %1088 = vsyncadd [#allocation4], 4294967280 }
 0x40b   :  { %712 = vsyncpa [#allocation3], 1 }
 0x40c   :  { %713 = vsyncpa [#allocation6], 1 }
 0x40d   :  { %714 = vsyncpa [#allocation4], 1 }

</bundles_post_ra>
